<compile_context>
chip_gen: v6e
topology: v6e:2x2x1
jax: 0.10.0
libtpu: 0.0.40
codegen_flags: <defaults>
</compile_context>

<pallas_src>
import functools

import jax
import jax.numpy as jnp
from jax import lax
from jax.experimental import pallas as pl
from jax.experimental.pallas import tpu as pltpu


def _round_up(x, m):
    return (x + m - 1) // m * m


# ----------------------------- kernel body ---------------------------------
def _roberta_emb_kernel(ids_ref,                 # SMEM int32[T_pad]   (scalar prefetch)
                        tt_ref, posid_ref,       # VMEM (1, tile, 1) int32
                        word_hbm,                # HBM/ANY (V, H) word table
                        small_tab_ref,           # VMEM (n_pos + n_typ, H), resident
                        gamma_ref, beta_ref,     # VMEM (1, H)
                        out_ref,                 # VMEM (tile, H)
                        wbuf, sem,               # scratch: VMEM (tile, H), DMA sem
                        *, tile, n_pos, pos_offset, eps):
    i = pl.program_id(0)
    base = i * tile

    # ---- issue all word-row gather DMAs for this tile (latencies overlap) ----
    @pl.loop(0, tile)
    def _issue(r):
        row = ids_ref[base + r]
        pltpu.make_async_copy(word_hbm.at[pl.ds(row, 1), :],
                              wbuf.at[pl.ds(r, 1), :],
                              sem).start()

    # ---- position + token-type embeddings: one one-hot matmul against the ----
    # ---- VMEM-resident concatenated small table (overlaps the gather DMAs) ----
    pid = posid_ref[0] + pos_offset            # (tile, 1) int32, RoBERTa offset
    tti = tt_ref[0] + n_pos                    # (tile, 1) -> row in concat table
    n_small = small_tab_ref.shape[0]
    iota = lax.broadcasted_iota(jnp.int32, (tile, n_small), 1)
    onehot = jnp.logical_or(iota == pid, iota == tti).astype(jnp.float32)
    small = jnp.dot(onehot, small_tab_ref[...].astype(jnp.float32),
                    preferred_element_type=jnp.float32,
                    precision=lax.Precision.HIGHEST)         # (tile, H)

    # ---- wait for the word rows (one wait per issued row copy) ----
    @pl.loop(0, tile)
    def _drain(r):
        pltpu.make_async_copy(word_hbm.at[pl.ds(0, 1), :],
                              wbuf.at[pl.ds(0, 1), :],
                              sem).wait()

    x = wbuf[...].astype(jnp.float32) + small                 # (tile, H)

    # ---- LayerNorm over hidden, one pass (sum and sum-of-squares) ----
    h = x.shape[-1]
    s1 = jnp.sum(x, axis=-1, keepdims=True)
    s2 = jnp.sum(x * x, axis=-1, keepdims=True)
    mean = s1 * (1.0 / h)
    var = s2 * (1.0 / h) - mean * mean
    inv = lax.rsqrt(var + eps)
    y = (x - mean) * inv * gamma_ref[...].astype(jnp.float32) \
        + beta_ref[...].astype(jnp.float32)

    # TODO(synk): nn.Dropout is identity in eval mode; training-mode dropout
    # would use pltpu.prng_seed / pltpu.prng_random_bits here.
    out_ref[...] = y.astype(out_ref.dtype)


# ------------------------------ wrapper -------------------------------------
def roberta_embeddings(input_ids, token_type_ids, position_ids,
                       word_emb, pos_emb, type_emb,
                       ln_gamma, ln_beta,
                       *, pad_token_id, layer_norm_eps, tokens_per_tile=256):
    B, S = input_ids.shape
    T = B * S
    V, H = word_emb.shape
    n_pos = pos_emb.shape[0]
    n_typ = type_emb.shape[0]

    # Token tile size: multiple of 8, no bigger than needed.
    tile = max(8, min(int(tokens_per_tile), _round_up(T, 8)))
    tile = _round_up(tile, 8)
    num_tiles = pl.cdiv(T, tile)
    T_pad = num_tiles * tile

    def _pad_flat(x):
        x = x.reshape(T).astype(jnp.int32)
        if T_pad != T:
            x = jnp.pad(x, (0, T_pad - T))   # pad with id 0 (valid row)
        return x

    in_ids = _pad_flat(input_ids)                                    # SMEM prefetch
    tt_ids = _pad_flat(token_type_ids).reshape(num_tiles, tile, 1)   # VMEM tiles
    pos_ids = _pad_flat(position_ids).reshape(num_tiles, tile, 1)    # VMEM tiles

    small_tab = jnp.concatenate([pos_emb, type_emb], axis=0)         # (n_pos+n_typ, H)
    gamma2 = ln_gamma.reshape(1, H)
    beta2 = ln_beta.reshape(1, H)

    kernel = functools.partial(
        _roberta_emb_kernel,
        tile=tile, n_pos=n_pos,
        pos_offset=int(pad_token_id) + 1, eps=float(layer_norm_eps))

    grid_spec = pltpu.PrefetchScalarGridSpec(
        num_scalar_prefetch=1,
        grid=(num_tiles,),
        in_specs=[
            pl.BlockSpec((1, tile, 1), lambda i, ids: (i, 0, 0)),    # token-type ids
            pl.BlockSpec((1, tile, 1), lambda i, ids: (i, 0, 0)),    # position ids
            pl.BlockSpec(memory_space=pl.ANY),                       # word table (HBM)
            pl.BlockSpec((n_pos + n_typ, H), lambda i, ids: (0, 0)), # small table
            pl.BlockSpec((1, H), lambda i, ids: (0, 0)),             # gamma
            pl.BlockSpec((1, H), lambda i, ids: (0, 0)),             # beta
        ],
        out_specs=pl.BlockSpec((tile, H), lambda i, ids: (i, 0)),
        scratch_shapes=[pltpu.VMEM((tile, H), word_emb.dtype),
                        pltpu.SemaphoreType.DMA],
    )

    out = pl.pallas_call(
        kernel,
        out_shape=jax.ShapeDtypeStruct((T_pad, H), jnp.float32),
        grid_spec=grid_spec,
        compiler_params=pltpu.CompilerParams(
            dimension_semantics=("parallel",)),
    )(in_ids, tt_ids, pos_ids, word_emb, small_tab, gamma2, beta2)

    return out[:T].reshape(B, S, H)


# ------------------------------- demo ---------------------------------------
if __name__ == "__main__":
    # Small, RoBERTa-like config.
    vocab_size = 100
    hidden_size = 32
    max_position_embeddings = 64
    type_vocab_size = 2
    pad_token_id = 1
    layer_norm_eps = 1e-5

    B, S = 2, 8

    key = jax.random.PRNGKey(0)
    k_w, k_p, k_t, k_ids, _ = jax.random.split(key, 5)

    word_emb = 0.02 * jax.random.normal(k_w, (vocab_size, hidden_size), jnp.float32)
    pos_emb = 0.02 * jax.random.normal(
        k_p, (max_position_embeddings + 2, hidden_size), jnp.float32)
    type_emb = 0.02 * jax.random.normal(
        k_t, (type_vocab_size, hidden_size), jnp.float32)
    ln_gamma = jnp.ones((hidden_size,), jnp.float32)
    ln_beta = jnp.zeros((hidden_size,), jnp.float32)

    input_ids = jax.random.randint(k_ids, (B, S), 0, vocab_size, dtype=jnp.int32)
    token_type_ids = jnp.zeros((B, S), jnp.int32)
    position_ids = jnp.broadcast_to(jnp.arange(S, dtype=jnp.int32), (B, S))

    out = roberta_embeddings(
        input_ids, token_type_ids, position_ids,
        word_emb, pos_emb, type_emb, ln_gamma, ln_beta,
        pad_token_id=pad_token_id, layer_norm_eps=layer_norm_eps)
    out = jax.block_until_ready(out)

    # Pure-JAX reference check (matches the PyTorch module semantics).
    ref = (word_emb[input_ids]
           + type_emb[token_type_ids]
           + pos_emb[pad_token_id + 1 + position_ids])
    mean = ref.mean(-1, keepdims=True)
    var = ((ref - mean) ** 2).mean(-1, keepdims=True)
    ref = (ref - mean) / jnp.sqrt(var + layer_norm_eps) * ln_gamma + ln_beta

    assert out.shape == (B, S, hidden_size)
    assert jnp.allclose(out, ref, atol=1e-4, rtol=1e-4), \
        float(jnp.max(jnp.abs(out - ref)))
    print("KERNEL_OK")
</pallas_src>

<mosaic_0001>
module attributes {stable_mosaic.version = 11 : i64} {
  func.func @_roberta_emb_kernel(%arg0: i32, %arg1: memref<16xi32, #tpu.memory_space<smem>>, %arg2: memref<1x16x1xi32, #tpu.memory_space<vmem>>, %arg3: memref<1x16x1xi32, #tpu.memory_space<vmem>>, %arg4: memref<100x32xf32, #tpu.memory_space<any>>, %arg5: memref<68x32xf32, #tpu.memory_space<vmem>>, %arg6: memref<1x32xf32, #tpu.memory_space<vmem>>, %arg7: memref<1x32xf32, #tpu.memory_space<vmem>>, %arg8: memref<16x32xf32, #tpu.memory_space<vmem>>, %arg9: memref<16x32xf32, #tpu.memory_space<vmem>>, %arg10: memref<!tpu.dma_semaphore, #tpu.memory_space<semaphore_mem>>) attributes {dimension_semantics = [#tpu.dimension_semantics<parallel>], iteration_bounds = array<i64: 1>, scalar_prefetch = 1 : i64, scratch_operands = 2 : i64, tpu.core_type = #tpu.core_type<tc>, window_params = [{transform_indices = @transform_0, window_bounds = array<i64: 1, 16, 1>}, {transform_indices = @transform_1, window_bounds = array<i64: 1, 16, 1>}, {}, {pipeline_mode = #tpu.pipeline_mode<synchronous>, transform_indices = @transform_3, window_bounds = array<i64: 68, 32>}, {pipeline_mode = #tpu.pipeline_mode<synchronous>, transform_indices = @transform_4, window_bounds = array<i64: 1, 32>}, {pipeline_mode = #tpu.pipeline_mode<synchronous>, transform_indices = @transform_5, window_bounds = array<i64: 1, 32>}, {transform_indices = @transform_6, window_bounds = array<i64: 16, 32>}]} {
    %c16_i32 = arith.constant 16 : i32
    %0 = arith.muli %arg0, %c16_i32 : i32
    %c0_i32 = arith.constant 0 : i32
    %c16_i32_0 = arith.constant 16 : i32
    %1 = arith.addi %c0_i32, %c16_i32_0 : i32
    %c1_i32 = arith.constant 1 : i32
    scf.for %arg11 = %c0_i32 to %1 step %c1_i32  : i32 {
      %c1_i32_25 = arith.constant 1 : i32
      %48 = arith.muli %arg11, %c1_i32_25 : i32
      %c0_i32_26 = arith.constant 0 : i32
      %49 = arith.addi %c0_i32_26, %48 : i32
      %50 = arith.addi %0, %49 : i32
      %51 = arith.index_cast %50 : i32 to index
      %52 = memref.load %arg1[%51] : memref<16xi32, #tpu.memory_space<smem>>
      %c0_i32_27 = arith.constant 0 : i32
      %53 = tpu.memref_slice %arg4[%52, %c0_i32_27] : memref<100x32xf32, #tpu.memory_space<any>> -> memref<1x32xf32, #tpu.memory_space<any>>
      %c0_i32_28 = arith.constant 0 : i32
      %54 = tpu.memref_slice %arg9[%49, %c0_i32_28] : memref<16x32xf32, #tpu.memory_space<vmem>> -> memref<1x32xf32, #tpu.memory_space<vmem>>
      tpu.enqueue_dma source(%53 : memref<1x32xf32, #tpu.memory_space<any>>) target(%54 : memref<1x32xf32, #tpu.memory_space<vmem>>) target_semaphore(%arg10 : memref<!tpu.dma_semaphore, #tpu.memory_space<semaphore_mem>>)
    }
    %c16_i32_1 = arith.constant 16 : i32
    %c0 = arith.constant 0 : index
    %c0_2 = arith.constant 0 : index
    %c0_3 = arith.constant 0 : index
    %2 = vector.load %arg3[%c0, %c0_2, %c0_3] : memref<1x16x1xi32, #tpu.memory_space<vmem>>, vector<1x16x1xi32>
    %3 = vector.shape_cast %2 : vector<1x16x1xi32> to vector<16x1xi32>
    %c2_i32 = arith.constant 2 : i32
    %4 = vector.broadcast %c2_i32 : i32 to vector<16x1xi32>
    %5 = arith.addi %3, %4 : vector<16x1xi32>
    %c0_4 = arith.constant 0 : index
    %c0_5 = arith.constant 0 : index
    %c0_6 = arith.constant 0 : index
    %6 = vector.load %arg2[%c0_4, %c0_5, %c0_6] : memref<1x16x1xi32, #tpu.memory_space<vmem>>, vector<1x16x1xi32>
    %7 = vector.shape_cast %6 : vector<1x16x1xi32> to vector<16x1xi32>
    %c66_i32 = arith.constant 66 : i32
    %8 = vector.broadcast %c66_i32 : i32 to vector<16x1xi32>
    %9 = arith.addi %7, %8 : vector<16x1xi32>
    %10 = tpu.iota {dimensions = array<i32: 1>} : vector<16x68xi32>
    %11 = vector.broadcast %5 : vector<16x1xi32> to vector<16x68xi32>
    %12 = arith.cmpi eq, %10, %11 : vector<16x68xi32>
    %13 = vector.broadcast %9 : vector<16x1xi32> to vector<16x68xi32>
    %14 = arith.cmpi eq, %10, %13 : vector<16x68xi32>
    %15 = arith.ori %12, %14 : vector<16x68xi1>
    %16 = arith.extui %15 : vector<16x68xi1> to vector<16x68xi32>
    %17 = arith.sitofp %16 : vector<16x68xi32> to vector<16x68xf32>
    %c0_7 = arith.constant 0 : index
    %c0_8 = arith.constant 0 : index
    %18 = vector.load %arg5[%c0_7, %c0_8] : memref<68x32xf32, #tpu.memory_space<vmem>>, vector<68x32xf32>
    %cst = arith.constant dense<0.000000e+00> : vector<16x32xf32>
    %19 = tpu.matmul %17, %18, %cst {dimension_numbers = #tpu.dot_dimension_numbers<[1], [0], [0], [1], [0, 0, 1, 1], [], []>, precision = #tpu.contract_precision<fp32>} : vector<16x68xf32>, vector<68x32xf32>, vector<16x32xf32> -> vector<16x32xf32>
    %c0_i32_9 = arith.constant 0 : i32
    %c16_i32_10 = arith.constant 16 : i32
    %20 = arith.addi %c0_i32_9, %c16_i32_10 : i32
    %c1_i32_11 = arith.constant 1 : i32
    scf.for %arg11 = %c0_i32_9 to %20 step %c1_i32_11  : i32 {
      %c0_i32_25 = arith.constant 0 : i32
      %c0_i32_26 = arith.constant 0 : i32
      %48 = tpu.memref_slice %arg4[%c0_i32_25, %c0_i32_26] : memref<100x32xf32, #tpu.memory_space<any>> -> memref<1x32xf32, #tpu.memory_space<any>>
      %c0_i32_27 = arith.constant 0 : i32
      %c0_i32_28 = arith.constant 0 : i32
      %49 = tpu.memref_slice %arg9[%c0_i32_27, %c0_i32_28] : memref<16x32xf32, #tpu.memory_space<vmem>> -> memref<1x32xf32, #tpu.memory_space<vmem>>
      tpu.wait_dma2 semaphore(%arg10 : memref<!tpu.dma_semaphore, #tpu.memory_space<semaphore_mem>>) src(%48 : memref<1x32xf32, #tpu.memory_space<any>>) dst(%49 : memref<1x32xf32, #tpu.memory_space<vmem>>)
    }
    %c0_12 = arith.constant 0 : index
    %c0_13 = arith.constant 0 : index
    %21 = vector.load %arg9[%c0_12, %c0_13] : memref<16x32xf32, #tpu.memory_space<vmem>>, vector<16x32xf32>
    %22 = arith.addf %21, %19 : vector<16x32xf32>
    %cst_14 = arith.constant dense<0.000000e+00> : vector<16xf32>
    %23 = vector.multi_reduction <add>, %22, %cst_14 [1] : vector<16x32xf32> to vector<16xf32>
    %24 = vector.shape_cast %23 : vector<16xf32> to vector<16x1xf32>
    %25 = arith.mulf %22, %22 : vector<16x32xf32>
    %cst_15 = arith.constant dense<0.000000e+00> : vector<16xf32>
    %26 = vector.multi_reduction <add>, %25, %cst_15 [1] : vector<16x32xf32> to vector<16xf32>
    %27 = vector.shape_cast %26 : vector<16xf32> to vector<16x1xf32>
    %cst_16 = arith.constant 3.125000e-02 : f32
    %28 = vector.broadcast %cst_16 : f32 to vector<16x1xf32>
    %29 = arith.mulf %24, %28 : vector<16x1xf32>
    %cst_17 = arith.constant 3.125000e-02 : f32
    %30 = vector.broadcast %cst_17 : f32 to vector<16x1xf32>
    %31 = arith.mulf %27, %30 : vector<16x1xf32>
    %32 = arith.mulf %29, %29 : vector<16x1xf32>
    %33 = arith.subf %31, %32 : vector<16x1xf32>
    %cst_18 = arith.constant 9.99999974E-6 : f32
    %34 = vector.broadcast %cst_18 : f32 to vector<16x1xf32>
    %35 = arith.addf %33, %34 : vector<16x1xf32>
    %36 = math.rsqrt %35 : vector<16x1xf32>
    %37 = vector.broadcast %29 : vector<16x1xf32> to vector<16x32xf32>
    %38 = arith.subf %22, %37 : vector<16x32xf32>
    %39 = vector.broadcast %36 : vector<16x1xf32> to vector<16x32xf32>
    %40 = arith.mulf %38, %39 : vector<16x32xf32>
    %c0_19 = arith.constant 0 : index
    %c0_20 = arith.constant 0 : index
    %41 = vector.load %arg6[%c0_19, %c0_20] : memref<1x32xf32, #tpu.memory_space<vmem>>, vector<1x32xf32>
    %42 = vector.broadcast %41 : vector<1x32xf32> to vector<16x32xf32>
    %43 = arith.mulf %40, %42 : vector<16x32xf32>
    %c0_21 = arith.constant 0 : index
    %c0_22 = arith.constant 0 : index
    %44 = vector.load %arg7[%c0_21, %c0_22] : memref<1x32xf32, #tpu.memory_space<vmem>>, vector<1x32xf32>
    %45 = vector.broadcast %44 : vector<1x32xf32> to vector<16x32xf32>
    %46 = arith.addf %43, %45 : vector<16x32xf32>
    %c0_23 = arith.constant 0 : index
    %c0_24 = arith.constant 0 : index
    %47 = vector.load %arg8[%c0_23, %c0_24] : memref<16x32xf32, #tpu.memory_space<vmem>>, vector<16x32xf32>
    tpu.vector_store %arg8[%c0_23, %c0_24], %46 {strides = array<i32>} : memref<16x32xf32, #tpu.memory_space<vmem>>, vector<16x32xf32>,
    return
  }
  func.func @transform_0(%arg0: i32, %arg1: memref<16xi32, #tpu.memory_space<smem>>) -> (i32, i32, i32) {
    %c0_i32 = arith.constant 0 : i32
    %c0_i32_0 = arith.constant 0 : i32
    %c0_i32_1 = arith.constant 0 : i32
    return %arg0, %c0_i32, %c0_i32_0 : i32, i32, i32
  }
  func.func @transform_1(%arg0: i32, %arg1: memref<16xi32, #tpu.memory_space<smem>>) -> (i32, i32, i32) {
    %c0_i32 = arith.constant 0 : i32
    %c0_i32_0 = arith.constant 0 : i32
    %c0_i32_1 = arith.constant 0 : i32
    return %arg0, %c0_i32, %c0_i32_0 : i32, i32, i32
  }
  func.func @transform_3(%arg0: i32, %arg1: memref<16xi32, #tpu.memory_space<smem>>) -> (i32, i32) {
    %c0_i32 = arith.constant 0 : i32
    %c0_i32_0 = arith.constant 0 : i32
    %c0_i32_1 = arith.constant 0 : i32
    return %c0_i32, %c0_i32_0 : i32, i32
  }
  func.func @transform_4(%arg0: i32, %arg1: memref<16xi32, #tpu.memory_space<smem>>) -> (i32, i32) {
    %c0_i32 = arith.constant 0 : i32
    %c0_i32_0 = arith.constant 0 : i32
    %c0_i32_1 = arith.constant 0 : i32
    return %c0_i32, %c0_i32_0 : i32, i32
  }
  func.func @transform_5(%arg0: i32, %arg1: memref<16xi32, #tpu.memory_space<smem>>) -> (i32, i32) {
    %c0_i32 = arith.constant 0 : i32
    %c0_i32_0 = arith.constant 0 : i32
    %c0_i32_1 = arith.constant 0 : i32
    return %c0_i32, %c0_i32_0 : i32, i32
  }
  func.func @transform_6(%arg0: i32, %arg1: memref<16xi32, #tpu.memory_space<smem>>) -> (i32, i32) {
    %c0_i32 = arith.constant 0 : i32
    %c0_i32_0 = arith.constant 0 : i32
    return %arg0, %c0_i32 : i32, i32
  }
}

</mosaic_0001>

<bundles_post_ra>
// kernel: tpu_custom_call.1
= control target key start
LH: loop header
LB: loop body
LE: loop exit
PB: predicated region body
PF: predicated region fallthrough
CT: control target
= control target key end

     0   :  { %s1430_s0 = inlined_call_operand.vmem [shape: s32[16], index: 0, kind: input, shape index: {}]   ;;  %s1431_s1 = inlined_call_operand.vmem [shape: s32[1,16,1], index: 1, kind: input, shape index: {}]   ;;  %s1432_s2 = inlined_call_operand.vmem [shape: s32[1,16,1], index: 2, kind: input, shape index: {}]   ;;  %s1433_s3 = inlined_call_operand.vmem [shape: f32[100,32], index: 3, kind: input, shape index: {}]   ;;  %s1434_s4 = inlined_call_operand.vmem [shape: f32[68,32], index: 4, kind: input, shape index: {}]   ;;  %s1435_s5 = inlined_call_operand.vmem [shape: f32[1,32], index: 5, kind: input, shape index: {}]   ;;  %s1436_s6 = inlined_call_operand.vmem [shape: f32[1,32], index: 6, kind: input, shape index: {}]   ;;  %s1437_s7 = inlined_call_operand.hbm [shape: f32[16,32], index: 7, kind: output, shape index: {}]  }
   0x1   :  { %s12_s26 = sshll.u32 %s1430_s0, 4  ;;  %s13_s26 = int_to_ptr.vmem [resolvable:$true] %s12_s26 }
   0x2   :  { %s1070_s27 = scalar_lea.vmem %s13_s26, 16  ;;  %p1075_p1 = scmp.lt.s32.totalorder %s13_s26, %s13_s26 }
   0x3   :  { %p1071_p0 = scmp.ne.s32.totalorder %s13_s26, %s1070_s27  ;;  %p1076_p2 = scmp.lt.s32.totalorder %s1070_s27, %s1070_s27 }
   0x5   :  { %p1077_p3 = por %p1076_p2, %p1075_p1 }
   0x7   :  { %p1078_p4 = pnand %p1077_p3, %p1071_p0 }
   0x9   :  { %1081 = shalt.err (!%p1078_p4)  }
   0xa   :  { %s1124_s28 = smov [#allocation5]  }
   0xb   :  { %15 = dma.vmem_to_smem %s13_s26, 16, %s1124_s28, [#allocation4] }
   0xc   :  { %1110 = dma.done.wait [#allocation4], 16 }
   0xd   :  { %1111 = vsyncadd [#allocation4], 4294967280 }
   0xe   :  { %17 = sfence }
   0xf   :  { %18 = vsyncpa [#allocation7], 0  ;;  %s1116_s29 = smov 0  }
  0x10 LB: > { %s37_s30 = sld [smem:[#allocation5 + %s1118_s29]]  ;;  %s39_s10 = scalar_lea.vmem [#allocation2], %s1118_s29  ;;  %s1118_s29 = sphi %s1116_s29, %s35_s29  }
  0x16   : > { %s38_s9 = scalar_lea.vmem %s1433_s3, %s37_s30 }
  0x17   : > { %v58_v0 = vld [vmem:[%s38_s9] sm:$0x1] }
  0x18   : > { %59 = vst [vmem:[%s39_s10] sm:$0x1] %v58_v0 }
  0x19   : > { %85 = vsyncadd [#allocation3], 16  ;;  %s35_s29 = sadd.s32 1, %s1118_s29  }
  0x1a   : > { %p32_p5 = scmp.ge.s32.totalorder %s35_s29, 16  }
  0x1b   :  { %v87_v1 = vld [vmem:[%s1432_s2 + $0x8] sm:$0xff] (%p32_p5)  ;;  %v86_v2 = vld [vmem:[%s1432_s2] sm:$0xff] (%p32_p5)  ;;  %vm134_vm0 = vcmask (%p32_p5), 1043456   ;;  %v1125_v4 = vmov (%p32_p5), 0   ;;  %v125_v12 = vld [vmem:[%s1434_s4 + $0x38] sm:$0xff] (%p32_p5)  ;;  %vm127_vm2 = vcmask (%p32_p5), 556032  }
  0x1c   :  { %34 = sbr.rel (!%p32_p5) target bundleno = 16 (0x10), region = 96  ;;  %v91_v3 = vld [vmem:[%s1431_s1 + $0x8] sm:$0xff] (%p32_p5)  ;;  %1065 = vset.pattern.permute.xlu1 (%p32_p5), %v1125_v4  ;;  %1064 = vset.pattern.permute.xlu0 (%p32_p5), %v1125_v4  ;;  %v89_v5 = vadd.s32 (%p32_p5), 2, %v87_v1  ;;  %v88_v6 = vadd.s32 (%p32_p5), 2, %v86_v2  ;;  %v90_v7 = vld [vmem:[%s1431_s1] sm:$0xff] (%p32_p5)  ;;  %v124_v13 = vld [vmem:[%s1434_s4 + $0x30] sm:$0xff] (%p32_p5)  ;;  %v94_v1 = vlaneseq (%p32_p5) }
  0x1d   :  { %v126_v8 = vld [vmem:[%s1434_s4 + $0x40] sm:$0xf] (%p32_p5)  ;;  %v93_v9 = vadd.s32 (%p32_p5), 66, %v91_v3  ;;  %v92_v10 = vadd.s32 (%p32_p5), 66, %v90_v7  ;;  %v123_v14 = vld [vmem:[%s1434_s4 + $0x28] sm:$0xff] (%p32_p5)  ;;  %v1202_v16 = vand.u32 (%p32_p5), 4294901760, %v125_v12 }
  0x1e   :  { %v136_v11 = vsel (%p32_p5), %vm134_vm0, %v126_v8, 0  ;;  %100 = vperm.xlu1 (%p32_p5), %1065, %v89_v5   ;;  %97 = vperm.xlu0 (%p32_p5), %1064, %v88_v6   ;;  %v1204_v17 = vand.u32 (%p32_p5), 4294901760, %v124_v13  ;;  %v1206_v18 = vand.u32 (%p32_p5), 4294901760, %v123_v14  ;;  %v122_v19 = vld [vmem:[%s1434_s4 + $0x20] sm:$0xff] (%p32_p5)  ;;  %v121_v20 = vld [vmem:[%s1434_s4 + $0x18] sm:$0xff] (%p32_p5)  ;;  %v120_v23 = vld [vmem:[%s1434_s4 + $0x10] sm:$0xff] (%p32_p5) }
  0x1f   :  { %v1200_v15 = vand.u32 (%p32_p5), 4294901760, %v136_v11  ;;  %v1214_v21 = vand.u32 (%p32_p5), 4294901760, %v122_v19  ;;  %v1216_v22 = vand.u32 (%p32_p5), 4294901760, %v121_v20  ;;  %v119_v24 = vld [vmem:[%s1434_s4 + $0x8] sm:$0xff] (%p32_p5)  ;;  %v1228_v26 = vsub.f32 (%p32_p5), %v125_v12, %v1202_v16  ;;  %v118_v43 = vld [vmem:[%s1434_s4] sm:$0xff] (%p32_p5)  ;;  %s1120_s4 = smov (%p32_p5), 0  }
  0x20   :  { %v1231_v27 = vsub.f32 (%p32_p5), %v124_v13, %v1204_v17  ;;  %v1234_v28 = vsub.f32 (%p32_p5), %v123_v14, %v1206_v18  ;;  %v1244_v31 = vand.u32 (%p32_p5), 4294901760, %v120_v23  ;;  %v1246_v32 = vand.u32 (%p32_p5), 4294901760, %v119_v24 }
  0x21   :  { %v1225_v25 = vsub.f32 %v136_v11, %v1200_v15  ;;  %916 = vmatprep.subr.mxu0 %v1200_v15  ;;  %v1238_v29 = vsub.f32 %v122_v19, %v1214_v21  ;;  %v1242_v30 = vsub.f32 %v121_v20, %v1216_v22  ;;  %v1252_v34 = vand.u32 4294901760, %v1228_v26 }
  0x22   :  { %917 = vmatpush3.msra.mxu0 %v1200_v15  ;;  %108 = vperm.xlu1 %1065, %v93_v9   ;;  %v1255_v35 = vand.u32 4294901760, %v1231_v27  ;;  %v1258_v36 = vand.u32 4294901760, %v1234_v28  ;;  %v1272_v41 = vsub.f32 %v120_v23, %v1244_v31  ;;  %v1285_v47 = vsub.f32 %v119_v24, %v1246_v32 }
  0x23   :  { %105 = vperm.xlu0 %1064, %v92_v10   ;;  %v1249_v33 = vand.u32 4294901760, %v1225_v25  ;;  %v1261_v37 = vand.u32 4294901760, %v1238_v29  ;;  %918 = vmatprep.subr.mxu0 %v1202_v16  ;;  %v257_v39 = vsub.f32 %v1228_v26, %v1252_v34  ;;  %v1275_v42 = vand.u32 4294901760, %v1242_v30 }
  0x24   :  { %v264_v40 = vsub.f32 %v1231_v27, %v1255_v35  ;;  %919 = vmatpush3.msra.mxu0 %v1202_v16  ;;  %v271_v46 = vsub.f32 %v1234_v28, %v1258_v36  ;;  %v1291_v50 = vand.u32 4294901760, %v1272_v41  ;;  %v1294_v51 = vand.u32 4294901760, %v118_v43 }
  0x25   :  { %v250_v38 = vsub.f32 %v1225_v25, %v1249_v33  ;;  %920 = vmatprep.subr.mxu0 %v1204_v17  ;;  %v258_v45 = vand.u32 4294901760, %v257_v39  ;;  %v278_v49 = vsub.f32 %v1238_v29, %v1261_v37  ;;  %v285_v53 = vsub.f32 %v1242_v30, %v1275_v42 }
  0x26   :  { %921 = vmatpush3.msra.mxu0 %v1204_v17  ;;  %v265_v48 = vand.u32 4294901760, %v264_v40  ;;  %v272_v52 = vand.u32 4294901760, %v271_v46  ;;  %v1300_v54 = vand.u32 4294901760, %v1285_v47  ;;  %v1303_v55 = vsub.f32 %v118_v43, %v1294_v51 }
  0x27   :  { %v251_v44 = vand.u32 4294901760, %v250_v38  ;;  %922 = vmatprep.subr.mxu0 %v1206_v18  ;;  %v279_v56 = vand.u32 4294901760, %v278_v49  ;;  %v292_v57 = vsub.f32 %v1272_v41, %v1291_v50  ;;  %v286_v59 = vand.u32 4294901760, %v285_v53 }
  0x28   :  { %923 = vmatpush3.msra.mxu0 %v1206_v18  ;;  %v1310_v58 = vand.u32 4294901760, %v1303_v55  ;;  %v299_v60 = vsub.f32 %v1285_v47, %v1300_v54  ;;  %v95_v4 = vand.u32 127, %v94_v1  ;;  %v1126_v7 = vmov 0.0  }
  0x29   :  { %937 = vmatprep.subr.mxu1 %v251_v44  ;;  %924 = vmatprep.subr.mxu0 %v1214_v21  ;;  %v293_v61 = vand.u32 4294901760, %v292_v57 }
  0x2a   :  { %938 = vmatpush3.msra.mxu1 %v251_v44  ;;  %925 = vmatpush3.msra.mxu0 %v1214_v21  ;;  %v306_v62 = vsub.f32 %v1303_v55, %v1310_v58  ;;  %v300_v63 = vand.u32 4294901760, %v299_v60 }
  0x2b   :  { %939 = vmatprep.subr.mxu1 %v258_v45  ;;  %926 = vmatprep.subr.mxu0 %v1216_v22 }
  0x2c   :  { %940 = vmatpush3.msra.mxu1 %v258_v45  ;;  %927 = vmatpush3.msra.mxu0 %v1216_v22  ;;  %v307_v0 = vand.u32 4294901760, %v306_v62 }
  0x2d   :  { %941 = vmatprep.subr.mxu1 %v265_v48  ;;  %928 = vmatprep.subr.mxu0 %v1244_v31 }
  0x2e   :  { %942 = vmatpush3.msra.mxu1 %v265_v48  ;;  %929 = vmatpush3.msra.mxu0 %v1244_v31 }
  0x2f   :  { %943 = vmatprep.subr.mxu1 %v272_v52  ;;  %930 = vmatprep.subr.mxu0 %v1246_v32 }
  0x30   :  { %944 = vmatpush3.msra.mxu1 %v272_v52  ;;  %931 = vmatpush3.msra.mxu0 %v1246_v32 }
  0x31   :  { %945 = vmatprep.subr.mxu1 %v279_v56  ;;  %932 = vmatprep.subr.mxu0 %v1294_v51 }
  0x32   :  { %946 = vmatpush3.msra.mxu1 %v279_v56  ;;  %933 = vmatpush3.msra.mxu0 %v1294_v51 }
  0x33   :  { %947 = vmatprep.subr.mxu1 %v286_v59  ;;  %958 = vmatprep.subr.mxu0 %v1225_v25 }
  0x34   :  { %948 = vmatpush3.msra.mxu1 %v286_v59 }
  0x35   :  { %949 = vmatprep.subr.mxu1 %v293_v61 }
  0x36   :  { %950 = vmatpush3.msra.mxu1 %v293_v61 }
  0x37   :  { %951 = vmatprep.subr.mxu1 %v300_v63 }
  0x38   :  { %952 = vmatpush3.msra.mxu1 %v300_v63 }
  0x39   :  { %953 = vmatprep.subr.mxu1 %v307_v0 }
  0x3a   :  { %954 = vmatpush3.msra.mxu1 %v307_v0 }
  0x3b   :  { %979 = vmatprep.subr.mxu1 %v1200_v15 }
  0x99   :  { %v101_v2 = vpop.permute.xlu1 %100  ;;  %v98_v3 = vpop.permute.xlu0 %97 }
  0x9a   :  { %vm103_vm1 = vcmp.eq.s32.totalorder %v95_v4, %v101_v2  ;;  %vm102_vm5 = vcmp.eq.s32.totalorder %v95_v4, %v98_v3 }
  0x9d   :  { %v109_v5 = vpop.permute.xlu1 %108 }
  0x9e   :  { %v106_v6 = vpop.permute.xlu0 %105  ;;  %vm111_vm3 = vcmp.eq.s32.totalorder %v95_v4, %v109_v5 }
  0x9f   :  { %vm110_vm4 = vcmp.eq.s32.totalorder %v95_v4, %v106_v6  ;;  %vm113_vm6 = vmor %vm103_vm1, %vm111_vm3 }
  0xa0   :  { %v1325_v8 = vsel %vm113_vm6, 1.0, %v1126_v7  ;;  %vm112_vm7 = vmor %vm102_vm5, %vm110_vm4 }
  0xa1   :  { %v132_v9 = vsel %vm127_vm2, %v1325_v8, 0  ;;  %v1329_v10 = vsel %vm112_vm7, 1.0, %v1126_v7 }
  0xa2   :  { %v223_v11 = vsub.f32 %v132_v9, %v132_v9  ;;  %v129_v12 = vsel %vm127_vm2, %v1329_v10, 0  ;;  %955 = vmatprep.mubr.msk.f32.mxu1 %vm127_vm2, %v1329_v10 }
  0xa3   :  { %v213_v13 = vsub.f32 %v129_v12, %v129_v12  ;;  %956 = vmatmul.mubr.msk.f32.vlgmr.msra.gmra.mxu1 %vm127_vm2, %v1325_v8 }
  0xa4   :  { %980 = vmatpush3.msra.mxu1 %v1200_v15  ;;  %v224_v14 = vand.u32 4294901760, %v223_v11 }
  0xa5   :  { %981 = vmatprep.subr.mxu1 %v1202_v16  ;;  %v214_v19 = vand.u32 4294901760, %v213_v13 }
  0xa6   :  { %982 = vmatpush3.msra.mxu1 %v1202_v16  ;;  %v225_v20 = vsub.f32 %v223_v11, %v224_v14 }
  0xa7   :  { %983 = vmatprep.subr.mxu1 %v1204_v17  ;;  %997 = vmatprep.mubr.f32.mxu1 %v214_v19  ;;  %v215_v23 = vsub.f32 %v213_v13, %v214_v19 }
  0xa8   :  { %984 = vmatpush3.msra.mxu1 %v1204_v17  ;;  %v226_v24 = vand.u32 4294901760, %v225_v20 }
  0xa9   :  { %985 = vmatprep.subr.mxu1 %v1206_v18  ;;  %v216_v38 = vand.u32 4294901760, %v215_v23 }
  0xaa   :  { %986 = vmatpush3.msra.mxu1 %v1206_v18 }
  0xab   :  { %987 = vmatprep.subr.mxu1 %v1214_v21  ;;  %934 = vmatprep.mubr.f32.mxu0 %v216_v38 }
  0xac   :  { %988 = vmatpush3.msra.mxu1 %v1214_v21  ;;  %935 = vmatmul.mubr.f32.vlgmr.msra.gmra.mxu0 %v226_v24 }
  0xad   :  { %959 = vmatpush3.msra.mxu0 %v1225_v25  ;;  %989 = vmatprep.subr.mxu1 %v1216_v22 }
  0xae   :  { %960 = vmatprep.subr.mxu0 %v1228_v26  ;;  %976 = vmatprep.mubr.f32.mxu0 %v213_v13 }
  0xaf   :  { %990 = vmatpush3.msra.mxu1 %v1216_v22  ;;  %961 = vmatpush3.msra.mxu0 %v1228_v26 }
  0xb0   :  { %991 = vmatprep.subr.mxu1 %v1244_v31  ;;  %962 = vmatprep.subr.mxu0 %v1231_v27 }
  0xb1   :  { %992 = vmatpush3.msra.mxu1 %v1244_v31  ;;  %963 = vmatpush3.msra.mxu0 %v1231_v27 }
  0xb2   :  { %993 = vmatprep.subr.mxu1 %v1246_v32  ;;  %964 = vmatprep.subr.mxu0 %v1234_v28 }
  0xb3   :  { %994 = vmatpush3.msra.mxu1 %v1246_v32  ;;  %965 = vmatpush3.msra.mxu0 %v1234_v28 }
  0xb4   :  { %995 = vmatprep.subr.mxu1 %v1294_v51  ;;  %966 = vmatprep.subr.mxu0 %v1238_v29 }
  0xb5   :  { %996 = vmatpush3.msra.mxu1 %v1294_v51  ;;  %967 = vmatpush3.msra.mxu0 %v1238_v29 }
  0xb6   :  { %998 = vmatmul.mubr.f32.vlgmr.msra.gmra.mxu1 %v224_v14  ;;  %1021 = vmatprep.subr.mxu1 %v1200_v15 }
  0xb7   :  { %968 = vmatprep.subr.mxu0 %v1242_v30  ;;  %1022 = vmatpush3.msra.mxu1 %v1200_v15 }
  0xb8   :  { %1039 = vmatprep.mubr.msk.f32.mxu1 %vm127_vm2, %v1329_v10  ;;  %969 = vmatpush3.msra.mxu0 %v1242_v30 }
  0xb9   :  { %1023 = vmatprep.subr.mxu1 %v1202_v16  ;;  %970 = vmatprep.subr.mxu0 %v1272_v41 }
  0xba   :  { %1024 = vmatpush3.msra.mxu1 %v1202_v16  ;;  %971 = vmatpush3.msra.mxu0 %v1272_v41 }
  0xbb   :  { %1025 = vmatprep.subr.mxu1 %v1204_v17  ;;  %972 = vmatprep.subr.mxu0 %v1285_v47 }
  0xbc   :  { %1026 = vmatpush3.msra.mxu1 %v1204_v17  ;;  %973 = vmatpush3.msra.mxu0 %v1285_v47 }
  0xbd   :  { %1027 = vmatprep.subr.mxu1 %v1206_v18  ;;  %974 = vmatprep.subr.mxu0 %v1303_v55 }
  0xbe   :  { %1028 = vmatpush3.msra.mxu1 %v1206_v18  ;;  %975 = vmatpush3.msra.mxu0 %v1303_v55 }
  0xbf   :  { %1029 = vmatprep.subr.mxu1 %v1214_v21  ;;  %977 = vmatmul.mubr.f32.vlgmr.msra.gmra.mxu0 %v223_v11 }
  0xc0   :  { %1000 = vmatprep.subr.mxu0 %v1249_v33  ;;  %1030 = vmatpush3.msra.mxu1 %v1214_v21 }
  0xc1   :  { %1001 = vmatpush3.msra.mxu0 %v1249_v33  ;;  %1018 = vmatprep.mubr.msk.f32.mxu0 %vm127_vm2, %v1329_v10 }
  0xc2   :  { %1031 = vmatprep.subr.mxu1 %v1216_v22  ;;  %1002 = vmatprep.subr.mxu0 %v1252_v34 }
  0xc3   :  { %1032 = vmatpush3.msra.mxu1 %v1216_v22  ;;  %1003 = vmatpush3.msra.mxu0 %v1252_v34 }
  0xc4   :  { %1033 = vmatprep.subr.mxu1 %v1244_v31  ;;  %1004 = vmatprep.subr.mxu0 %v1255_v35 }
  0xc5   :  { %1034 = vmatpush3.msra.mxu1 %v1244_v31  ;;  %1005 = vmatpush3.msra.mxu0 %v1255_v35 }
  0xc6   :  { %1035 = vmatprep.subr.mxu1 %v1246_v32  ;;  %1006 = vmatprep.subr.mxu0 %v1258_v36 }
  0xc7   :  { %1036 = vmatpush3.msra.mxu1 %v1246_v32  ;;  %1007 = vmatpush3.msra.mxu0 %v1258_v36 }
  0xc8   :  { %1037 = vmatprep.subr.mxu1 %v1294_v51  ;;  %1008 = vmatprep.subr.mxu0 %v1261_v37 }
  0xc9   :  { %1038 = vmatpush3.msra.mxu1 %v1294_v51  ;;  %1009 = vmatpush3.msra.mxu0 %v1261_v37 }
  0xca   :  { %1040 = vmatmul.mubr.msk.f32.vlgmr.msra.gmra.mxu1 %vm127_vm2, %v1325_v8  ;;  %1010 = vmatprep.subr.mxu0 %v1275_v42 }
  0xcb   :  { %1011 = vmatpush3.msra.mxu0 %v1275_v42 }
  0xcc   :  { %1012 = vmatprep.subr.mxu0 %v1291_v50 }
  0xcd   :  { %1013 = vmatpush3.msra.mxu0 %v1291_v50 }
  0xce   :  { %1014 = vmatprep.subr.mxu0 %v1300_v54 }
  0xcf   :  { %1015 = vmatpush3.msra.mxu0 %v1300_v54 }
  0xd0   :  { %1016 = vmatprep.subr.mxu0 %v1310_v58 }
  0xd1   :  { %1017 = vmatpush3.msra.mxu0 %v1310_v58 }
  0xd2   :  { %1019 = vmatmul.mubr.msk.f32.vlgmr.msra.gmra.mxu0 %vm127_vm2, %v1325_v8 }
 0x163   :  { %v957_v16 = vpop.f32.mrf.mxu1 }
 0x165   :  { %v344_v21 = vpop.f32.mrf.mxu1 }
 0x16c   :  { %v936_v15 = vpop.f32.mrf.mxu0 }
 0x16d   :  { %v351_v22 = vadd.f32 %v957_v16, %v936_v15 }
 0x16e   :  { %v218_v17 = vpop.f32.mrf.mxu0 }
 0x16f   :  { %v345_v27 = vadd.f32 %v344_v21, %v218_v17 }
 0x176   :  { %v999_v25 = vpop.f32.mrf.mxu1 }
 0x178   :  { %v529_v30 = vpop.f32.mrf.mxu1 }
 0x17f   :  { %v978_v18 = vpop.f32.mrf.mxu0 }
 0x180   :  { %v448_v28 = vadd.f32 %v978_v18, %v351_v22 }
 0x181   :  { %v440_v26 = vpop.f32.mrf.mxu0 }
 0x182   :  { %v441_v29 = vadd.f32 %v440_v26, %v345_v27  ;;  %v538_v31 = vadd.f32 %v999_v25, %v448_v28 }
 0x184   :  { %v530_v35 = vadd.f32 %v529_v30, %v441_v29 }
 0x18a   :  { %v1041_v32 = vpop.f32.mrf.mxu1 }
 0x18c   :  { %v721_v40 = vpop.f32.mrf.mxu1 }
 0x192   :  { %v1020_v33 = vpop.f32.mrf.mxu0 }
 0x193   :  { %v642_v34 = vadd.f32 %v1020_v33, %v538_v31 }
 0x194   :  { %v635_v36 = vpop.f32.mrf.mxu0 }
 0x195   :  { %v728_v37 = vadd.f32 %v1041_v32, %v642_v34  ;;  %v636_v39 = vadd.f32 %v635_v36, %v530_v35 }
 0x197   :  { %v722_v41 = vadd.f32 %v721_v40, %v636_v39 }
 0x198 LB: > { %1112 = dma.done.wait [#allocation3], 16  ;;  %s1122_s4 = sphi %s1120_s4, %s736_s4  }
 0x199   : > { %1113 = vsyncadd [#allocation3], 4294967280  ;;  %s736_s4 = sadd.s32 1, %s1122_s4  }
 0x19a   : > { %p733_p6 = scmp.ge.s32.totalorder %s736_s4, 16  }
 0x19b   :  { %v740_v42 = vld [vmem:[#allocation2] sm:$0xff] (%p733_p6)  ;;  %vm744_vm8 = vcmask (%p733_p6), 261120   ;;  %v741_v43 = vld [vmem:[#allocation2 + $0x8] sm:$0xff] (%p733_p6)  ;;  %s1127_s14 = smov (%p733_p6), [#allocation6]  }
 0x19c   :  { %735 = sbr.rel (!%p733_p6) target bundleno = 408 (0x198), region = 107  ;;  %v742_v44 = vadd.f32 (%p733_p6), %v740_v42, %v722_v41  ;;  %v743_v45 = vadd.f32 (%p733_p6), %v741_v43, %v728_v37  ;;  %v847_v4 = vld [vmem:[%s1435_s5] ss:$0 sm:$0xff] (%p733_p6)  ;;  %s800_s15 = sshll.u32 (%p733_p6), %s1127_s14, 4  ;;  %s801_s15 = int_to_ptr.vmem [resolvable:$true] %s800_s15 }
 0x19d   :  { %v848_v6 = vld [vmem:[%s1436_s6] ss:$0 sm:$0xff] (%p733_p6)  ;;  %s1082_s5 = scalar_lea.vmem (%p733_p6), %s801_s15, 256  ;;  %p1087_p8 = scmp.lt.s32.totalorder (%p733_p6), %s801_s15, %s801_s15 }
 0x19e   :  { %v745_v46 = vsel (%p733_p6), %vm744_vm8, %v742_v44, 0.0  ;;  %v751_v47 = vmul.f32 (%p733_p6), %v742_v44, %v742_v44  ;;  %v752_v48 = vmul.f32 (%p733_p6), %v743_v45, %v743_v45  ;;  %v748_v50 = vsel (%p733_p6), %vm744_vm8, %v743_v45, 0.0  ;;  %p1083_p7 = scmp.ne.s32.totalorder (%p733_p6), %s801_s15, %s1082_s5  ;;  %p1088_p9 = scmp.lt.s32.totalorder (%p733_p6), %s1082_s5, %s1082_s5 }
 0x19f   :  { %746 = vadd.xlane.f32.xlu0 (%p733_p6), %v745_v46 }
 0x1a0   :  { %v753_v49 = vsel (%p733_p6), %vm744_vm8, %v751_v47, 0.0  ;;  %v756_v51 = vsel (%p733_p6), %vm744_vm8, %v752_v48, 0.0  ;;  %p1089_p10 = por (%p733_p6), %p1088_p9, %p1087_p8 }
 0x1a1   :  { %754 = vadd.xlane.f32.xlu1 %v753_v49 }
 0x1a2   :  { %p1090_p11 = pnand %p1089_p10, %p1083_p7 }
 0x1a3   :  { %749 = vadd.xlane.f32.xlu0 %v748_v50 }
 0x1a5   :  { %757 = vadd.xlane.f32.xlu1 %v756_v51 }
 0x228   :  { %v747_v52 = vpop.xlane.xlu0 %746 }
 0x229   :  { %v759_v53 = vmul.f32 0.03125, %v747_v52 }
 0x22a   :  { %v755_v54 = vpop.xlane.xlu1 %754 }
 0x22b   :  { %v763_v55 = vmul.f32 %v759_v53, %v759_v53  ;;  %v761_v56 = vmul.f32 0.03125, %v755_v54  ;;  %v771_v2 = vsub.f32 %v742_v44, %v759_v53 }
 0x22c   :  { %v750_v57 = vpop.xlane.xlu0 %749 }
 0x22d   :  { %v765_v58 = vsub.f32 %v761_v56, %v763_v55  ;;  %v760_v59 = vmul.f32 0.03125, %v750_v57 }
 0x22e   :  { %v758_v60 = vpop.xlane.xlu1 %757 }
 0x22f   :  { %v767_v61 = vadd.f32 1e-05, %v765_v58  ;;  %v764_v62 = vmul.f32 %v760_v59, %v760_v59  ;;  %v762_v63 = vmul.f32 0.03125, %v758_v60  ;;  %v772_v7 = vsub.f32 %v743_v45, %v760_v59 }
 0x231   :  { %1066 = vrsqrt.f32 %v767_v61  ;;  %v766_v0 = vsub.f32 %v762_v63, %v764_v62 }
 0x233   :  { %v768_v1 = vadd.f32 1e-05, %v766_v0 }
 0x235   :  { %1068 = vrsqrt.f32 %v768_v1 }
 0x23e   :  { %v1067_v3 = vpop.eup %1066 }
 0x23f   :  { %v773_v5 = vmul.f32 %v1067_v3, %v771_v2 }
 0x241   :  { %v782_v8 = vmul.f32 %v847_v4, %v773_v5 }
 0x242   :  { %v1069_v9 = vpop.eup %1068 }
 0x243   :  { %v774_v10 = vmul.f32 %v1069_v9, %v772_v7  ;;  %v791_v11 = vadd.f32 %v848_v6, %v782_v8 }
 0x245   :  { %v783_v12 = vmul.f32 %v847_v4, %v774_v10  ;;  %793 = vst.msk [vmem:[#allocation6] sm:$0xff] %vm744_vm8, %v791_v11 }
 0x247   :  { %v792_v13 = vadd.f32 %v848_v6, %v783_v12 }
 0x249   :  { %794 = vst.msk [vmem:[#allocation6 + $0x8] sm:$0xff] %vm744_vm8, %v792_v13 }
 0x24a   :  { %1093 = shalt.err (!%p1090_p11)
}
 0x24b   :  { %s1128_s6 = smov 128   ;;  %s1129_s16 = smov 8  }
 0x24c   :  { %806 = dma.vmem_to_hbm [thread:$0]  %s801_s15, 256, %s1437_s7, [#allocation7], %s1128_s6, %s1128_s6, %s1129_s16  }
 0x24d   :  { %1114 = dma.done.wait [#allocation7], 256  }
 0x24e   :  { %1115 = vsyncadd [#allocation7], 4294967040 }
 0x24f   :  { %810 = vsyncpa [#allocation7], 1 }
 0x250   :  { %811 = vsyncmov [#allocation3] }
 0x253   :  { %s812_s3 = vpop.sfrf %811 }
 0x254   :  { %p849_p12 = scmp.ne.s32.totalorder %s812_s3, 0 }
 0x256   :  { %816 = shalt.err (%p849_p12)  }

</bundles_post_ra>
